<compile_context>
chip_gen: v5e
topology: v5e:2x2
jax: 0.10.0
libtpu: 0.0.40
codegen_flags: <defaults>
</compile_context>

<pallas_src>
import functools

import jax
import jax.numpy as jnp
from jax.experimental import pallas as pl
from jax.experimental.pallas import tpu as pltpu

LEAKY_SLOPE = 0.01        # PyTorch F.leaky_relu default negative_slope
K_IN = 28 * 28            # 784
H1, H2, OUT = 16, 16, 10


def _round_up(n, m):
    return (n + m - 1) // m * m


def digitnet_kernel(x_ref, w1_ref, b1_ref, w2_ref, b2_ref, w3_ref, b3_ref,
                    out_ref):
    # layer 1 (f32 MXU) + leaky_relu
    h = jnp.dot(x_ref[...], w1_ref[...],
                preferred_element_type=jnp.float32) + b1_ref[...]
    h = jnp.where(h > 0, h, LEAKY_SLOPE * h)

    # layer 2 + leaky_relu (tiny, kept fused -- no extra grid step / HBM trip)
    h = jnp.dot(h, w2_ref[...],
                preferred_element_type=jnp.float32) + b2_ref[...]
    h = jnp.where(h > 0, h, LEAKY_SLOPE * h)

    # layer 3 + softmax(dim=-1); exact divide is hidden under the x DMA.
    logits = jnp.dot(h, w3_ref[...],
                     preferred_element_type=jnp.float32) + b3_ref[...]
    m = jnp.max(logits, axis=-1, keepdims=True)
    e = jnp.exp(logits - m)
    denom = jnp.sum(e, axis=-1, keepdims=True)
    out_ref[...] = (e / denom).astype(out_ref.dtype)


@functools.partial(jax.jit, static_argnames=("tb_max",))
def digitnet_forward(x, params, *, tb_max=2048):
    """x: (B, 784) f32.  params: f32 weights/biases from init_params."""
    w1, b1, w2, b2, w3, b3 = params
    B, K = x.shape

    # Batch tile: multiple of 8 (sublanes), capped at tb_max.
    # tb_max=2048 f32 -> ~6.1 MiB per x buffer, ~12.3 MiB double-buffered.
    TB = min(tb_max, _round_up(B, 8))
    grid = (pl.cdiv(B, TB),)   # ragged last block handled by Pallas masking

    def full_resident(arr):
        # Whole array as one block, same block every grid step -> stays in VMEM.
        return pl.BlockSpec(arr.shape, lambda i: (0,) * arr.ndim)

    param_bytes = sum(int(a.size) * a.dtype.itemsize
                      for a in (w1, b1, w2, b2, w3, b3))
    cost = pl.CostEstimate(
        flops=2 * B * (K * H1 + H1 * H2 + H2 * OUT),
        transcendentals=B * OUT,
        bytes_accessed=B * K * 4 + param_bytes + B * OUT * 4,
    )

    # Double-buffered x + out blocks + params, with headroom; capped at 48 MiB
    # so it stays safely under v7x's 64 MiB physical VMEM per TensorCore.
    vmem_limit = 2 * TB * K * 4 + 2 * TB * OUT * 4 + 2 * param_bytes \
        + 4 * 1024 * 1024
    vmem_limit = min(max(vmem_limit, 32 * 1024 * 1024), 48 * 1024 * 1024)

    out = pl.pallas_call(
        digitnet_kernel,
        out_shape=jax.ShapeDtypeStruct((B, OUT), jnp.float32),
        grid_spec=pltpu.PrefetchScalarGridSpec(
            num_scalar_prefetch=0,
            grid=grid,
            in_specs=[
                pl.BlockSpec((TB, K), lambda i: (i, 0)),   # x: batch-tiled f32
                full_resident(w1), full_resident(b1),
                full_resident(w2), full_resident(b2),
                full_resident(w3), full_resident(b3),
            ],
            out_specs=pl.BlockSpec((TB, OUT), lambda i: (i, 0)),
        ),
        compiler_params=pltpu.CompilerParams(
            dimension_semantics=("parallel",),   # shard batch over v7x's 2 TCs
            vmem_limit_bytes=int(vmem_limit),
        ),
        cost_estimate=cost,
    )(x, w1, b1, w2, b2, w3, b3)

    return out


def init_params(key):
    """Deterministic f32 init mimicking nn.Linear (uniform +/- 1/sqrt(fan_in)).

    Weights stored transposed vs. PyTorch, i.e. (in_features, out_features),
    so the kernel computes x @ W + b directly.
    """
    sizes = [(K_IN, H1), (H1, H2), (H2, OUT)]
    params = []
    for i, (fan_in, fan_out) in enumerate(sizes):
        kw, kb = jax.random.split(jax.random.fold_in(key, i))
        bound = 1.0 / jnp.sqrt(float(fan_in))
        w = jax.random.uniform(kw, (fan_in, fan_out), jnp.float32, -bound, bound)
        b = jax.random.uniform(kb, (1, fan_out), jnp.float32, -bound, bound)
        params += [w, b]
    return tuple(params)


def reference_forward(x, params):
    """Pure-JAX f32 reference matching the PyTorch module."""
    w1, b1, w2, b2, w3, b3 = params
    h = x @ w1 + b1
    h = jnp.where(h > 0, h, LEAKY_SLOPE * h)
    h = h @ w2 + b2
    h = jnp.where(h > 0, h, LEAKY_SLOPE * h)
    logits = h @ w3 + b3
    return jax.nn.softmax(logits, axis=-1)


if __name__ == "__main__":
    key = jax.random.PRNGKey(0)
    k_x, k_p = jax.random.split(key)

    batch = 8
    x = jax.random.normal(k_x, (batch, K_IN), dtype=jnp.float32)
    params = init_params(k_p)

    out = digitnet_forward(x, params)
    jax.block_until_ready(out)

    ref = reference_forward(x, params)
    assert out.shape == (batch, OUT)
    # Both paths run f32 now; tolerance kept loose vs default-precision XLA dots.
    assert jnp.allclose(out, ref, atol=2e-2, rtol=0.0)
    # Exact softmax divide -> rows sum to 1 to f32 precision.
    assert jnp.allclose(jnp.sum(out, axis=-1), 1.0, atol=1e-3)

    print("KERNEL_OK")
</pallas_src>

<mosaic_0001>
module attributes {stable_mosaic.version = 11 : i64} {
  func.func @digitnet_kernel(%arg0: i32, %arg1: memref<8x784xf32, #tpu.memory_space<vmem>>, %arg2: memref<784x16xf32, #tpu.memory_space<vmem>>, %arg3: memref<1x16xf32, #tpu.memory_space<vmem>>, %arg4: memref<16x16xf32, #tpu.memory_space<vmem>>, %arg5: memref<1x16xf32, #tpu.memory_space<vmem>>, %arg6: memref<16x10xf32, #tpu.memory_space<vmem>>, %arg7: memref<1x10xf32, #tpu.memory_space<vmem>>, %arg8: memref<8x10xf32, #tpu.memory_space<vmem>>) attributes {dimension_semantics = [#tpu.dimension_semantics<parallel>], iteration_bounds = array<i64: 1>, scalar_prefetch = 0 : i64, scratch_operands = 0 : i64, tpu.core_type = #tpu.core_type<tc>, window_params = [{transform_indices = @transform_0, window_bounds = array<i64: 8, 784>}, {pipeline_mode = #tpu.pipeline_mode<synchronous>, transform_indices = @transform_1, window_bounds = array<i64: 784, 16>}, {pipeline_mode = #tpu.pipeline_mode<synchronous>, transform_indices = @transform_2, window_bounds = array<i64: 1, 16>}, {pipeline_mode = #tpu.pipeline_mode<synchronous>, transform_indices = @transform_3, window_bounds = array<i64: 16, 16>}, {pipeline_mode = #tpu.pipeline_mode<synchronous>, transform_indices = @transform_4, window_bounds = array<i64: 1, 16>}, {pipeline_mode = #tpu.pipeline_mode<synchronous>, transform_indices = @transform_5, window_bounds = array<i64: 16, 10>}, {pipeline_mode = #tpu.pipeline_mode<synchronous>, transform_indices = @transform_6, window_bounds = array<i64: 1, 10>}, {transform_indices = @transform_7, window_bounds = array<i64: 8, 10>}]} {
    %c0 = arith.constant 0 : index
    %c0_0 = arith.constant 0 : index
    %0 = vector.load %arg1[%c0, %c0_0] : memref<8x784xf32, #tpu.memory_space<vmem>>, vector<8x784xf32>
    %c0_1 = arith.constant 0 : index
    %c0_2 = arith.constant 0 : index
    %1 = vector.load %arg2[%c0_1, %c0_2] : memref<784x16xf32, #tpu.memory_space<vmem>>, vector<784x16xf32>
    %cst = arith.constant dense<0.000000e+00> : vector<8x16xf32>
    %2 = tpu.matmul %0, %1, %cst {dimension_numbers = #tpu.dot_dimension_numbers<[1], [0], [0], [1], [0, 0, 1, 1], [], []>} : vector<8x784xf32>, vector<784x16xf32>, vector<8x16xf32> -> vector<8x16xf32>
    %c0_3 = arith.constant 0 : index
    %c0_4 = arith.constant 0 : index
    %3 = vector.load %arg3[%c0_3, %c0_4] : memref<1x16xf32, #tpu.memory_space<vmem>>, vector<1x16xf32>
    %4 = vector.broadcast %3 : vector<1x16xf32> to vector<8x16xf32>
    %5 = arith.addf %2, %4 : vector<8x16xf32>
    %cst_5 = arith.constant 0.000000e+00 : f32
    %6 = vector.broadcast %cst_5 : f32 to vector<8x16xf32>
    %7 = arith.cmpf ogt, %5, %6 : vector<8x16xf32>
    %cst_6 = arith.constant 0.00999999977 : f32
    %8 = vector.broadcast %cst_6 : f32 to vector<8x16xf32>
    %9 = arith.mulf %8, %5 : vector<8x16xf32>
    %10 = arith.select %7, %5, %9 : vector<8x16xi1>, vector<8x16xf32>
    %c0_7 = arith.constant 0 : index
    %c0_8 = arith.constant 0 : index
    %11 = vector.load %arg4[%c0_7, %c0_8] : memref<16x16xf32, #tpu.memory_space<vmem>>, vector<16x16xf32>
    %cst_9 = arith.constant dense<0.000000e+00> : vector<8x16xf32>
    %12 = tpu.matmul %10, %11, %cst_9 {dimension_numbers = #tpu.dot_dimension_numbers<[1], [0], [0], [1], [0, 0, 1, 1], [], []>} : vector<8x16xf32>, vector<16x16xf32>, vector<8x16xf32> -> vector<8x16xf32>
    %c0_10 = arith.constant 0 : index
    %c0_11 = arith.constant 0 : index
    %13 = vector.load %arg5[%c0_10, %c0_11] : memref<1x16xf32, #tpu.memory_space<vmem>>, vector<1x16xf32>
    %14 = vector.broadcast %13 : vector<1x16xf32> to vector<8x16xf32>
    %15 = arith.addf %12, %14 : vector<8x16xf32>
    %cst_12 = arith.constant 0.000000e+00 : f32
    %16 = vector.broadcast %cst_12 : f32 to vector<8x16xf32>
    %17 = arith.cmpf ogt, %15, %16 : vector<8x16xf32>
    %cst_13 = arith.constant 0.00999999977 : f32
    %18 = vector.broadcast %cst_13 : f32 to vector<8x16xf32>
    %19 = arith.mulf %18, %15 : vector<8x16xf32>
    %20 = arith.select %17, %15, %19 : vector<8x16xi1>, vector<8x16xf32>
    %c0_14 = arith.constant 0 : index
    %c0_15 = arith.constant 0 : index
    %21 = vector.load %arg6[%c0_14, %c0_15] : memref<16x10xf32, #tpu.memory_space<vmem>>, vector<16x10xf32>
    %cst_16 = arith.constant dense<0.000000e+00> : vector<8x10xf32>
    %22 = tpu.matmul %20, %21, %cst_16 {dimension_numbers = #tpu.dot_dimension_numbers<[1], [0], [0], [1], [0, 0, 1, 1], [], []>} : vector<8x16xf32>, vector<16x10xf32>, vector<8x10xf32> -> vector<8x10xf32>
    %c0_17 = arith.constant 0 : index
    %c0_18 = arith.constant 0 : index
    %23 = vector.load %arg7[%c0_17, %c0_18] : memref<1x10xf32, #tpu.memory_space<vmem>>, vector<1x10xf32>
    %24 = vector.broadcast %23 : vector<1x10xf32> to vector<8x10xf32>
    %25 = arith.addf %22, %24 : vector<8x10xf32>
    %cst_19 = arith.constant dense<0xFF800000> : vector<8xf32>
    %26 = vector.multi_reduction <maximumf>, %25, %cst_19 [1] : vector<8x10xf32> to vector<8xf32>
    %27 = vector.shape_cast %26 : vector<8xf32> to vector<8x1xf32>
    %28 = vector.broadcast %27 : vector<8x1xf32> to vector<8x10xf32>
    %29 = arith.subf %25, %28 : vector<8x10xf32>
    %30 = math.exp %29 : vector<8x10xf32>
    %cst_20 = arith.constant dense<0.000000e+00> : vector<8xf32>
    %31 = vector.multi_reduction <add>, %30, %cst_20 [1] : vector<8x10xf32> to vector<8xf32>
    %32 = vector.shape_cast %31 : vector<8xf32> to vector<8x1xf32>
    %33 = vector.broadcast %32 : vector<8x1xf32> to vector<8x10xf32>
    %34 = arith.divf %30, %33 : vector<8x10xf32>
    %c0_21 = arith.constant 0 : index
    %c0_22 = arith.constant 0 : index
    %35 = vector.load %arg8[%c0_21, %c0_22] : memref<8x10xf32, #tpu.memory_space<vmem>>, vector<8x10xf32>
    tpu.vector_store %arg8[%c0_21, %c0_22], %34 {strides = array<i32>} : memref<8x10xf32, #tpu.memory_space<vmem>>, vector<8x10xf32>,
    return
  }
  func.func @transform_0(%arg0: i32) -> (i32, i32) {
    %c0_i32 = arith.constant 0 : i32
    %c0_i32_0 = arith.constant 0 : i32
    return %arg0, %c0_i32 : i32, i32
  }
  func.func @transform_1(%arg0: i32) -> (i32, i32) {
    %c0_i32 = arith.constant 0 : i32
    %c0_i32_0 = arith.constant 0 : i32
    %c0_i32_1 = arith.constant 0 : i32
    return %c0_i32, %c0_i32_0 : i32, i32
  }
  func.func @transform_2(%arg0: i32) -> (i32, i32) {
    %c0_i32 = arith.constant 0 : i32
    %c0_i32_0 = arith.constant 0 : i32
    %c0_i32_1 = arith.constant 0 : i32
    return %c0_i32, %c0_i32_0 : i32, i32
  }
  func.func @transform_3(%arg0: i32) -> (i32, i32) {
    %c0_i32 = arith.constant 0 : i32
    %c0_i32_0 = arith.constant 0 : i32
    %c0_i32_1 = arith.constant 0 : i32
    return %c0_i32, %c0_i32_0 : i32, i32
  }
  func.func @transform_4(%arg0: i32) -> (i32, i32) {
    %c0_i32 = arith.constant 0 : i32
    %c0_i32_0 = arith.constant 0 : i32
    %c0_i32_1 = arith.constant 0 : i32
    return %c0_i32, %c0_i32_0 : i32, i32
  }
  func.func @transform_5(%arg0: i32) -> (i32, i32) {
    %c0_i32 = arith.constant 0 : i32
    %c0_i32_0 = arith.constant 0 : i32
    %c0_i32_1 = arith.constant 0 : i32
    return %c0_i32, %c0_i32_0 : i32, i32
  }
  func.func @transform_6(%arg0: i32) -> (i32, i32) {
    %c0_i32 = arith.constant 0 : i32
    %c0_i32_0 = arith.constant 0 : i32
    %c0_i32_1 = arith.constant 0 : i32
    return %c0_i32, %c0_i32_0 : i32, i32
  }
  func.func @transform_7(%arg0: i32) -> (i32, i32) {
    %c0_i32 = arith.constant 0 : i32
    %c0_i32_0 = arith.constant 0 : i32
    return %arg0, %c0_i32 : i32, i32
  }
}

</mosaic_0001>

<bundles_post_ra>
// kernel: digitnet_forward.1
= control target key start
LH: loop header
LB: loop body
LE: loop exit
PB: predicated region body
PF: predicated region fallthrough
CT: control target
= control target key end

     0   :  { %s809_s0 = inlined_call_operand.vmem [shape: f32[8,784], index: 0, kind: input, shape index: {}]   ;;  %s810_s1 = inlined_call_operand.vmem [shape: f32[784,16], index: 1, kind: input, shape index: {}]   ;;  %s811_s2 = inlined_call_operand.vmem [shape: f32[1,16], index: 2, kind: input, shape index: {}]   ;;  %s812_s3 = inlined_call_operand.vmem [shape: f32[16,16], index: 3, kind: input, shape index: {}]   ;;  %s813_s4 = inlined_call_operand.vmem [shape: f32[1,16], index: 4, kind: input, shape index: {}]   ;;  %s814_s5 = inlined_call_operand.vmem [shape: f32[16,10], index: 5, kind: input, shape index: {}]   ;;  %s815_s6 = inlined_call_operand.vmem [shape: f32[1,10], index: 6, kind: input, shape index: {}]   ;;  %s816_s7 = inlined_call_operand.hbm [shape: f32[8,10], index: 7, kind: output, shape index: {}]  }
   0x1   :  { %v49_v0 = vld [vmem:[%s810_s1 + $0x78] sm:$0xff]  ;;  %v48_v1 = vld [vmem:[%s810_s1 + $0x70] sm:$0xff]  ;;  %v47_v4 = vld [vmem:[%s810_s1 + $0x68] sm:$0xff] }
   0x2   :  { %v65_v2 = vld [vmem:[%s810_s1 + $0xf8] sm:$0xff]  ;;  %140 = vmatpush.msra.mxu0 %v49_v0  ;;  %v64_v3 = vld [vmem:[%s810_s1 + $0xf0] sm:$0xff]  ;;  %v63_v5 = vld [vmem:[%s810_s1 + $0xe8] sm:$0xff] }
   0x3   :  { %160 = vmatpush.msra.mxu1 %v65_v2  ;;  %v46_v6 = vld [vmem:[%s810_s1 + $0x60] sm:$0xff]  ;;  %v45_v8 = vld [vmem:[%s810_s1 + $0x58] sm:$0xff]  ;;  %v44_v10 = vld [vmem:[%s810_s1 + $0x50] sm:$0xff] }
   0x4   :  { %141 = vmatpush.msra.mxu0 %v48_v1  ;;  %v62_v7 = vld [vmem:[%s810_s1 + $0xe0] sm:$0xff]  ;;  %v61_v9 = vld [vmem:[%s810_s1 + $0xd8] sm:$0xff]  ;;  %v60_v12 = vld [vmem:[%s810_s1 + $0xd0] sm:$0xff] }
   0x5   :  { %161 = vmatpush.msra.mxu1 %v64_v3  ;;  %v81_v11 = vld [vmem:[%s810_s1 + $0x178] sm:$0xff]  ;;  %v80_v13 = vld [vmem:[%s810_s1 + $0x170] sm:$0xff]  ;;  %v79_v15 = vld [vmem:[%s810_s1 + $0x168] sm:$0xff] }
   0x6   :  { %142 = vmatpush.msra.mxu0 %v47_v4  ;;  %180 = vmatpush.msra.mxu2 %v81_v11  ;;  %v97_v14 = vld [vmem:[%s810_s1 + $0x1f8] sm:$0xff]  ;;  %v96_v16 = vld [vmem:[%s810_s1 + $0x1f0] sm:$0xff]  ;;  %v43_v17 = vld [vmem:[%s810_s1 + $0x48] sm:$0xff] }
   0x7   :  { %162 = vmatpush.msra.mxu1 %v63_v5  ;;  %v59_v18 = vld [vmem:[%s810_s1 + $0xc8] sm:$0xff]  ;;  %200 = vmatpush.msra.mxu3 %v97_v14  ;;  %v78_v19 = vld [vmem:[%s810_s1 + $0x160] sm:$0xff]  ;;  %v77_v23 = vld [vmem:[%s810_s1 + $0x158] sm:$0xff] }
   0x8   :  { %143 = vmatpush.msra.mxu0 %v46_v6  ;;  %181 = vmatpush.msra.mxu2 %v80_v13  ;;  %v95_v20 = vld [vmem:[%s810_s1 + $0x1e8] sm:$0xff]  ;;  %v42_v21 = vld [vmem:[%s810_s1 + $0x40] sm:$0xff]  ;;  %v41_v25 = vld [vmem:[%s810_s1 + $0x38] sm:$0xff] }
   0x9   :  { %163 = vmatpush.msra.mxu1 %v62_v7  ;;  %v58_v22 = vld [vmem:[%s810_s1 + $0xc0] sm:$0xff]  ;;  %201 = vmatpush.msra.mxu3 %v96_v16  ;;  %v57_v26 = vld [vmem:[%s810_s1 + $0xb8] sm:$0xff]  ;;  %v76_v27 = vld [vmem:[%s810_s1 + $0x150] sm:$0xff] }
   0xa   :  { %144 = vmatpush.msra.mxu0 %v45_v8  ;;  %182 = vmatpush.msra.mxu2 %v79_v15  ;;  %v94_v24 = vld [vmem:[%s810_s1 + $0x1e0] sm:$0xff]  ;;  %v93_v28 = vld [vmem:[%s810_s1 + $0x1d8] sm:$0xff]  ;;  %v40_v29 = vld [vmem:[%s810_s1 + $0x30] sm:$0xff] }
   0xb   :  { %164 = vmatpush.msra.mxu1 %v61_v9  ;;  %202 = vmatpush.msra.mxu3 %v95_v20  ;;  %v56_v30 = vld [vmem:[%s810_s1 + $0xb0] sm:$0xff]  ;;  %v75_v31 = vld [vmem:[%s810_s1 + $0x148] sm:$0xff]  ;;  %v74_v35 = vld [vmem:[%s810_s1 + $0x140] sm:$0xff] }
   0xc   :  { %145 = vmatpush.msra.mxu0 %v44_v10  ;;  %183 = vmatpush.msra.mxu2 %v78_v19  ;;  %v92_v32 = vld [vmem:[%s810_s1 + $0x1d0] sm:$0xff]  ;;  %v39_v33 = vld [vmem:[%s810_s1 + $0x28] sm:$0xff]  ;;  %v38_v37 = vld [vmem:[%s810_s1 + $0x20] sm:$0xff] }
   0xd   :  { %165 = vmatpush.msra.mxu1 %v60_v12  ;;  %203 = vmatpush.msra.mxu3 %v94_v24  ;;  %v55_v34 = vld [vmem:[%s810_s1 + $0xa8] sm:$0xff]  ;;  %v54_v38 = vld [vmem:[%s810_s1 + $0xa0] sm:$0xff]  ;;  %v73_v39 = vld [vmem:[%s810_s1 + $0x138] sm:$0xff] }
   0xe   :  { %146 = vmatpush.msra.mxu0 %v43_v17  ;;  %184 = vmatpush.msra.mxu2 %v77_v23  ;;  %v91_v36 = vld [vmem:[%s810_s1 + $0x1c8] sm:$0xff]  ;;  %v90_v40 = vld [vmem:[%s810_s1 + $0x1c0] sm:$0xff]  ;;  %v37_v41 = vld [vmem:[%s810_s1 + $0x18] sm:$0xff] }
   0xf   :  { %166 = vmatpush.msra.mxu1 %v59_v18  ;;  %204 = vmatpush.msra.mxu3 %v93_v28  ;;  %v53_v42 = vld [vmem:[%s810_s1 + $0x98] sm:$0xff]  ;;  %v72_v43 = vld [vmem:[%s810_s1 + $0x130] sm:$0xff]  ;;  %v71_v47 = vld [vmem:[%s810_s1 + $0x128] sm:$0xff] }
  0x10   :  { %147 = vmatpush.msra.mxu0 %v42_v21  ;;  %185 = vmatpush.msra.mxu2 %v76_v27  ;;  %v89_v44 = vld [vmem:[%s810_s1 + $0x1b8] sm:$0xff]  ;;  %v36_v45 = vld [vmem:[%s810_s1 + $0x10] sm:$0xff]  ;;  %v35_v49 = vld [vmem:[%s810_s1 + $0x8] sm:$0xff] }
  0x11   :  { %167 = vmatpush.msra.mxu1 %v58_v22  ;;  %205 = vmatpush.msra.mxu3 %v92_v32  ;;  %v52_v46 = vld [vmem:[%s810_s1 + $0x90] sm:$0xff]  ;;  %v51_v50 = vld [vmem:[%s810_s1 + $0x88] sm:$0xff]  ;;  %v70_v51 = vld [vmem:[%s810_s1 + $0x120] sm:$0xff] }
  0x12   :  { %148 = vmatpush.msra.mxu0 %v41_v25  ;;  %186 = vmatpush.msra.mxu2 %v75_v31  ;;  %v88_v48 = vld [vmem:[%s810_s1 + $0x1b0] sm:$0xff]  ;;  %v87_v52 = vld [vmem:[%s810_s1 + $0x1a8] sm:$0xff]  ;;  %v34_v53 = vld [vmem:[%s810_s1] sm:$0xff] }
  0x13   :  { %168 = vmatpush.msra.mxu1 %v57_v26  ;;  %206 = vmatpush.msra.mxu3 %v91_v36  ;;  %v50_v54 = vld [vmem:[%s810_s1 + $0x80] sm:$0xff]  ;;  %v113_v55 = vld [vmem:[%s810_s1 + $0x278] sm:$0xff]  ;;  %v112_v59 = vld [vmem:[%s810_s1 + $0x270] sm:$0xff] }
  0x14   :  { %149 = vmatpush.msra.mxu0 %v40_v29  ;;  %187 = vmatpush.msra.mxu2 %v74_v35  ;;  %v129_v56 = vld [vmem:[%s810_s1 + $0x2f8] sm:$0xff]  ;;  %v86_v58 = vld [vmem:[%s810_s1 + $0x1a0] sm:$0xff]  ;;  %v128_v60 = vld [vmem:[%s810_s1 + $0x2f0] sm:$0xff] }
  0x15   :  { %169 = vmatpush.msra.mxu1 %v56_v30  ;;  %207 = vmatpush.msra.mxu3 %v90_v40  ;;  %v69_v57 = vld [vmem:[%s810_s1 + $0x118] sm:$0xff]  ;;  %v68_v61 = vld [vmem:[%s810_s1 + $0x110] sm:$0xff]  ;;  %v111_v63 = vld [vmem:[%s810_s1 + $0x268] sm:$0xff] }
  0x16   :  { %150 = vmatpush.msra.mxu0 %v39_v33  ;;  %188 = vmatpush.msra.mxu2 %v73_v39  ;;  %v85_v62 = vld [vmem:[%s810_s1 + $0x198] sm:$0xff]  ;;  %v110_v0 = vld [vmem:[%s810_s1 + $0x260] sm:$0xff]  ;;  %v127_v1 = vld [vmem:[%s810_s1 + $0x2e8] sm:$0xff] }
  0x17   :  { %170 = vmatpush.msra.mxu1 %v55_v34  ;;  %208 = vmatpush.msra.mxu3 %v89_v44  ;;  %v126_v2 = vld [vmem:[%s810_s1 + $0x2e0] sm:$0xff]  ;;  %v67_v3 = vld [vmem:[%s810_s1 + $0x108] sm:$0xff]  ;;  %v84_v4 = vld [vmem:[%s810_s1 + $0x190] sm:$0xff] }
  0x18   :  { %151 = vmatpush.msra.mxu0 %v38_v37  ;;  %189 = vmatpush.msra.mxu2 %v72_v43  ;;  %v66_v5 = vld [vmem:[%s810_s1 + $0x100] sm:$0xff]  ;;  %v83_v6 = vld [vmem:[%s810_s1 + $0x188] sm:$0xff] }
  0x19   :  { %171 = vmatpush.msra.mxu1 %v54_v38  ;;  %209 = vmatpush.msra.mxu3 %v88_v48 }
  0x1a   :  { %152 = vmatpush.msra.mxu0 %v37_v41  ;;  %190 = vmatpush.msra.mxu2 %v71_v47 }
  0x1b   :  { %172 = vmatpush.msra.mxu1 %v53_v42  ;;  %210 = vmatpush.msra.mxu3 %v87_v52 }
  0x1c   :  { %153 = vmatpush.msra.mxu0 %v36_v45  ;;  %191 = vmatpush.msra.mxu2 %v70_v51 }
  0x1d   :  { %173 = vmatpush.msra.mxu1 %v52_v46  ;;  %211 = vmatpush.msra.mxu3 %v86_v58 }
  0x1e   :  { %154 = vmatpush.msra.mxu0 %v35_v49  ;;  %192 = vmatpush.msra.mxu2 %v69_v57 }
  0x1f   :  { %174 = vmatpush.msra.mxu1 %v51_v50  ;;  %212 = vmatpush.msra.mxu3 %v85_v62 }
  0x20   :  { %155 = vmatpush.msra.mxu0 %v34_v53  ;;  %193 = vmatpush.msra.mxu2 %v68_v61 }
  0x21   :  { %175 = vmatpush.msra.mxu1 %v50_v54 }
  0x22   :  { %220 = vmatpush.msrb.mxu0 %v113_v55 }
  0x23   :  { %240 = vmatpush.msrb.mxu1 %v129_v56 }
  0x24   :  { %221 = vmatpush.msrb.mxu0 %v112_v59 }
  0x25   :  { %241 = vmatpush.msrb.mxu1 %v128_v60 }
  0x26   :  { %222 = vmatpush.msrb.mxu0 %v111_v63 }
  0x27   :  { %242 = vmatpush.msrb.mxu1 %v127_v1 }
  0x28   :  { %12 = vsyncpa [#allocation3], 0  ;;  %v109_v7 = vld [vmem:[%s810_s1 + $0x258] sm:$0xff]  ;;  %194 = vmatpush.msra.mxu2 %v67_v3  ;;  %213 = vmatpush.msra.mxu3 %v84_v4  ;;  %v29_v9 = vld [vmem:[%s809_s0 + $0x10] sm:$0xff]  ;;  %vm136_vm0 = vcmask 130048   ;;  %vm344_vm3 = vcmask 80896  }
  0x29   :  { %v125_v8 = vld [vmem:[%s810_s1 + $0x2d8] sm:$0xff]  ;;  %223 = vmatpush.msrb.mxu0 %v110_v0  ;;  %243 = vmatpush.msrb.mxu1 %v126_v2  ;;  %v82_v10 = vld [vmem:[%s810_s1 + $0x180] sm:$0xff]  ;;  %v108_v11 = vld [vmem:[%s810_s1 + $0x250] sm:$0xff]  ;;  %s377_s15 = sshll.u32 %s816_s7, 4  ;;  %s378_s15 = int_to_ptr.hbm [resolvable:$true] %s377_s15 }
  0x2a   :  { %v124_v12 = vld [vmem:[%s810_s1 + $0x2d0] sm:$0xff]  ;;  %195 = vmatpush.msra.mxu2 %v66_v5  ;;  %214 = vmatpush.msra.mxu3 %v83_v6  ;;  %v131_v13 = vld [vmem:[%s810_s1 + $0x308] sm:$0xff]  ;;  %v27_v14 = vld [vmem:[%s809_s0] sm:$0xff] }
  0x2b   :  { %224 = vmatpush.msrb.mxu0 %v109_v7  ;;  %244 = vmatpush.msrb.mxu1 %v125_v8  ;;  %v107_v15 = vld [vmem:[%s810_s1 + $0x248] sm:$0xff]  ;;  %v30_v17 = vld [vmem:[%s809_s0 + $0x18] sm:$0xff]  ;;  %v106_v19 = vld [vmem:[%s810_s1 + $0x240] sm:$0xff] }
  0x2c   :  { %v123_v16 = vld [vmem:[%s810_s1 + $0x2c8] sm:$0xff]  ;;  %196 = vmatmul.f32.vlgmr.msra.gmra.mxu2 %v29_v9  ;;  %215 = vmatpush.msra.mxu3 %v82_v10  ;;  %v122_v20 = vld [vmem:[%s810_s1 + $0x2c0] sm:$0xff]  ;;  %v105_v22 = vld [vmem:[%s810_s1 + $0x238] sm:$0xff] }
  0x2d   :  { %225 = vmatpush.msrb.mxu0 %v108_v11  ;;  %245 = vmatpush.msrb.mxu1 %v124_v12  ;;  %v28_v18 = vld [vmem:[%s809_s0 + $0x8] sm:$0xff]  ;;  %v130_v21 = vld [vmem:[%s810_s1 + $0x300] sm:$0xff]  ;;  %v121_v23 = vld [vmem:[%s810_s1 + $0x2b8] sm:$0xff] }
  0x2e   :  { %274 = vmatpush.msrb.mxu2 %v131_v13  ;;  %156 = vmatmul.f32.vlgmr.msra.gmra.mxu0 %v27_v14  ;;  %v33_v24 = vld [vmem:[%s809_s0 + $0x30] sm:$0xff]  ;;  %v103_v27 = vld [vmem:[%s810_s1 + $0x228] sm:$0xff]  ;;  %v102_v29 = vld [vmem:[%s810_s1 + $0x220] sm:$0xff] }
  0x2f   :  { %226 = vmatpush.msrb.mxu0 %v107_v15  ;;  %246 = vmatpush.msrb.mxu1 %v123_v16  ;;  %v104_v25 = vld [vmem:[%s810_s1 + $0x230] sm:$0xff]  ;;  %v119_v28 = vld [vmem:[%s810_s1 + $0x2a8] sm:$0xff]  ;;  %v118_v30 = vld [vmem:[%s810_s1 + $0x2a0] sm:$0xff] }
  0x30   :  { %216 = vmatmul.f32.vlgmr.msra.gmra.mxu3 %v30_v17  ;;  %176 = vmatmul.f32.vlgmr.msra.gmra.mxu1 %v28_v18  ;;  %v120_v26 = vld [vmem:[%s810_s1 + $0x2b0] sm:$0xff]  ;;  %v101_v31 = vld [vmem:[%s810_s1 + $0x218] sm:$0xff]  ;;  %v99_v35 = vld [vmem:[%s810_s1 + $0x208] sm:$0xff] }
  0x31   :  { %227 = vmatpush.msrb.mxu0 %v106_v19  ;;  %247 = vmatpush.msrb.mxu1 %v122_v20  ;;  %v117_v32 = vld [vmem:[%s810_s1 + $0x298] sm:$0xff]  ;;  %v100_v33 = vld [vmem:[%s810_s1 + $0x210] sm:$0xff]  ;;  %v115_v36 = vld [vmem:[%s810_s1 + $0x288] sm:$0xff] }
  0x32   :  { %275 = vmatpush.msrb.mxu2 %v130_v21  ;;  %v116_v34 = vld [vmem:[%s810_s1 + $0x290] sm:$0xff]  ;;  %v98_v37 = vld [vmem:[%s810_s1 + $0x200] sm:$0xff]  ;;  %v32_v40 = vld [vmem:[%s809_s0 + $0x28] sm:$0xff] }
  0x33   :  { %228 = vmatpush.msrb.mxu0 %v105_v22  ;;  %248 = vmatpush.msrb.mxu1 %v121_v23  ;;  %v114_v38 = vld [vmem:[%s810_s1 + $0x280] sm:$0xff]  ;;  %v284_v41 = vld [vmem:[%s812_s3 + $0x8] sm:$0xff] }
  0x34   :  { %386 = vmatmul.msk.f32.vlgmr.msrb.gmra.mxu2 %vm136_vm0, %v33_v24  ;;  %v31_v39 = vld [vmem:[%s809_s0 + $0x20] sm:$0xff]  ;;  %306 = vmatpush.msrb.mxu3 %v284_v41  ;;  %v316_v43 = vld [vmem:[%s814_s5 + $0x8] sm:$0xff] }
  0x35   :  { %229 = vmatpush.msrb.mxu0 %v104_v25  ;;  %249 = vmatpush.msrb.mxu1 %v120_v26  ;;  %v283_v42 = vld [vmem:[%s812_s3] sm:$0xff] }
  0x36   :  { %307 = vmatpush.msrb.mxu3 %v283_v42  ;;  %338 = vmatpush.msra.mxu2 %v316_v43  ;;  %v390_v44 = vld [vmem:[%s811_s2] ss:$0 sm:$0xff] }
  0x37   :  { %230 = vmatpush.msrb.mxu0 %v103_v27  ;;  %250 = vmatpush.msrb.mxu1 %v119_v28  ;;  %v315_v61 = vld [vmem:[%s814_s5] sm:$0xff] }
  0x38   :  { %339 = vmatpush.msra.mxu2 %v315_v61  ;;  %v391_v62 = vld [vmem:[%s813_s4] ss:$0 sm:$0xff]  ;;  %s423_s4 = smov [#allocation2]  }
  0x39   :  { %231 = vmatpush.msrb.mxu0 %v102_v29  ;;  %251 = vmatpush.msrb.mxu1 %v118_v30  ;;  %v392_v3 = vld [vmem:[%s815_s6] ss:$0 sm:$0xff]  ;;  %s375_s5 = sshll.u32 %s423_s4, 4  ;;  %s376_s5 = int_to_ptr.vmem [resolvable:$true] %s375_s5 }
  0x3b   :  { %232 = vmatpush.msrb.mxu0 %v101_v31  ;;  %252 = vmatpush.msrb.mxu1 %v117_v32 }
  0x3d   :  { %233 = vmatpush.msrb.mxu0 %v100_v33  ;;  %253 = vmatpush.msrb.mxu1 %v116_v34 }
  0x3f   :  { %234 = vmatpush.msrb.mxu0 %v99_v35  ;;  %254 = vmatpush.msrb.mxu1 %v115_v36 }
  0x41   :  { %235 = vmatpush.msrb.mxu0 %v98_v37  ;;  %255 = vmatpush.msrb.mxu1 %v114_v38 }
  0x42   :  { %236 = vmatmul.f32.vlgmr.msrb.gmra.mxu0 %v31_v39  ;;  %256 = vmatmul.f32.vlgmr.msrb.gmra.mxu1 %v32_v40 }
  0xab   :  { %v157_v45 = vpop.f32.mrf.mxu0 }
  0xac   :  { %v158_v46 = vadd.f32 %v390_v44, %v157_v45 }
  0xad   :  { %v177_v47 = vpop.f32.mrf.mxu1 }
  0xae   :  { %v178_v48 = vadd.f32 %v177_v47, %v158_v46 }
  0xaf   :  { %v197_v49 = vpop.f32.mrf.mxu2 }
  0xb0   :  { %v198_v50 = vadd.f32 %v197_v49, %v178_v48 }
  0xb3   :  { %v217_v51 = vpop.f32.mrf.mxu3 }
  0xb4   :  { %v218_v52 = vadd.f32 %v217_v51, %v198_v50 }
  0xb7   :  { %v277_v56 = vpop.f32.mrf.mxu2 }
  0xbf   :  { %v237_v53 = vpop.f32.mrf.mxu0  ;;  %v257_v54 = vpop.f32.mrf.mxu1 }
  0xc0   :  { %v238_v55 = vadd.f32 %v237_v53, %v218_v52 }
  0xc2   :  { %v258_v57 = vadd.f32 %v257_v54, %v238_v55 }
  0xc4   :  { %v278_v58 = vadd.f32 %v277_v56, %v258_v57 }
  0xc6   :  { %vm280_vm1 = vcmp.gt.f32.partialorder %v278_v58, 0.0  ;;  %v281_v59 = vmul.f32 0.01, %v278_v58 }
  0xc8   :  { %v282_v60 = vsel %vm280_vm1, %v278_v58, %v281_v59 }
  0xc9   :  { %387 = vmatmul.msk.f32.vlgmr.msrb.gmra.mxu3 %vm136_vm0, %v282_v60 }
 0x14c   :  { %v309_v63 = vpop.f32.mrf.mxu3 }
 0x14d   :  { %v310_v0 = vadd.f32 %v391_v62, %v309_v63 }
 0x14f   :  { %vm312_vm2 = vcmp.gt.f32.partialorder %v310_v0, 0.0  ;;  %v313_v1 = vmul.f32 0.01, %v310_v0 }
 0x151   :  { %v314_v2 = vsel %vm312_vm2, %v310_v0, %v313_v1 }
 0x152   :  { %388 = vmatmul.msk.f32.vlgmr.msra.gmra.mxu2 %vm136_vm0, %v314_v2 }
 0x1d5   :  { %v341_v4 = vpop.f32.mrf.mxu2 }
 0x1d6   :  { %v342_v5 = vadd.f32 %v392_v3, %v341_v4 }
 0x1d8   :  { %v345_v6 = vsel %vm344_vm3, %v342_v5, -inf }
 0x1d9   :  { %346 = vmax.xlane.f32.xlu0 %v345_v6 }
 0x24c   :  { %v347_v7 = vpop.xlane.xlu0 %346 }
 0x24d   :  { %v348_v8 = vsub.f32 %v342_v5, %v347_v7 }
 0x24f   :  { %v349_v9 = vmul.f32 1.442695, %v348_v8 }
 0x251   :  { %393 = vpow2.f32 %v349_v9 }
 0x257   :  { %v394_v10 = vpop.eup %393 }
 0x258   :  { %v351_v11 = vsel %vm344_vm3, %v394_v10, 0.0 }
 0x259   :  { %352 = vadd.xlane.f32.xlu0 %v351_v11 }
 0x2cc   :  { %v353_v12 = vpop.xlane.xlu0 %352 }
 0x2cd   :  { %395 = vrcp.f32 %v353_v12  ;;  %v365_v16 = vand.u32 2147483648, %v353_v12  ;;  %v363_v18 = vand.u32 2147483647, %v353_v12  ;;  %vm359_vm5 = vweird.f32 %v353_v12 }
 0x2cf   :  { %v366_v20 = vor.u32 1.1754944e-38, %v365_v16  ;;  %vm364_vm7 = vcmp.eq.f32.partialorder %v363_v18, 8.507059e+37 }
 0x2d3   :  { %v396_v13 = vpop.eup %395 }
 0x2d4   :  { %v355_v14 = vmul.f32 %v396_v13, %v353_v12  ;;  %vm360_vm4 = vweird.f32 %v396_v13 }
 0x2d5   :  { %vm361_vm6 = vmor %vm359_vm5, %vm360_vm4 }
 0x2d6   :  { %v356_v15 = vsub.f32 1.0, %v355_v14 }
 0x2d8   :  { %v357_v17 = vmul.f32 %v396_v13, %v356_v15 }
 0x2da   :  { %v358_v19 = vadd.f32 %v396_v13, %v357_v17 }
 0x2dc   :  { %v362_v21 = vsel %vm361_vm6, %v396_v13, %v358_v19 }
 0x2dd   :  { %v367_v22 = vsel %vm364_vm7, %v366_v20, %v362_v21 }
 0x2de   :  { %v368_v23 = vmul.f32 %v394_v10, %v367_v22 }
 0x2e0   :  { %369 = vst.msk [vmem:[#allocation2] sm:$0xff] %vm344_vm3, %v368_v23 }
 0x2e1   :  { %380 = dma.vmem_to_hbm [thread:$0]  %s376_s5, 128, %s378_s15, [#allocation3]  }
 0x2e2   :  { %421 = dma.done.wait [#allocation3], 128  }
 0x2e3   :  { %422 = vsyncadd [#allocation3], 4294967168 }
 0x2e4   :  { %385 = vsyncpa [#allocation3], 1 }

</bundles_post_ra>
